<compile_context>
chip_gen: v5e
topology: v5e:2x2
jax: 0.10.0
libtpu: 0.0.40
codegen_flags: <defaults>
</compile_context>

<pallas_src>
import functools

import jax
import jax.numpy as jnp
from jax.experimental import pallas as pl
from jax.experimental.pallas import tpu as pltpu

EPS = 1e-5      # torch.nn.LayerNorm default eps
HALO = 16       # sublane-aligned halo rows (bf16 packs 16 rows / tile); >= pad


def _fused_duration_kernel(x_ref, keep_ref, *refs,
                           n_layers, ksize, seq_len, items):
    """One grid step = `items` whole batch items = TM = items*seq_len rows.

    x_ref    : (TM, idim)  f32 input rows for this tile
    keep_ref : (TM, 1)     f32, 1.0 where the frame is valid, 0.0 where padded
    refs     : n_layers * (w (K,Cin,Cout) bf16, b (1,Cout), gamma (1,Cout),
                           beta (1,Cout)),
               lin_w (1, C) f32, lin_b (1, 1) f32,
               out_ref (TM, 1),
               halo scratch (TM + 2*HALO, cmax) bf16 (VMEM)
    """
    lw_ref = refs[4 * n_layers]
    lb_ref = refs[4 * n_layers + 1]
    out_ref = refs[4 * n_layers + 2]
    halo_ref = refs[4 * n_layers + 3]

    pad = (ksize - 1) // 2
    rows = x_ref.shape[0]
    cw = halo_ref.shape[1]

    # Zero only the two halo stripes that SAME-padding taps read (NOT the whole
    # buffer).  Re-done every grid step so the "parallel" axis stays race-free.
    zeros_stripe = jnp.zeros((HALO, cw), halo_ref.dtype)
    halo_ref[:HALO, :] = zeros_stripe
    halo_ref[HALO + rows:, :] = zeros_stripe

    keep = keep_ref[...]                                   # (TM, 1) f32

    # Hoisted batch-seam masks (one per tap offset), computed ONCE per tile.
    # Only needed when a tile holds >1 batch item (interior seams); the zero
    # halo stripes already handle the tile edges / SAME padding.
    neg_masks, pos_masks = {}, {}
    if items > 1:
        t_idx = jax.lax.broadcasted_iota(jnp.int32, (rows, 1), 0) % seq_len
        for s in range(1, pad + 1):
            neg_masks[s] = (t_idx >= s).astype(jnp.float32)            # tap -s
            pos_masks[s] = (t_idx < seq_len - s).astype(jnp.float32)   # tap +s

    def conv_relu_ln_mask(h, w_ref, b_ref, g_ref, beta_ref):
        cin = w_ref.shape[1]
        # Stage h into the bf16 halo (sublane-aligned offset HALO) so every
        # conv tap is a plain slice and the MXU sees native bf16 operands.
        halo_ref[HALO:HALO + rows, :cin] = h.astype(halo_ref.dtype)
        acc = None
        for j in range(ksize):                       # static taps, unrolled
            s = j - pad
            tap = halo_ref[HALO + s:HALO + s + rows, :cin]     # bf16
            d = jnp.dot(tap, w_ref[j], preferred_element_type=jnp.float32)
            # Zero contributions that cross a batch-item seam (equivalent to
            # zeroing the tap, by linearity); f32 multiply is VPU-friendly on
            # every TPU generation.
            if s < 0 and -s in neg_masks:
                d = d * neg_masks[-s]
            elif s > 0 and s in pos_masks:
                d = d * pos_masks[s]
            acc = d if acc is None else acc + d      # init from first tap
        acc = acc + b_ref[...]
        acc = jnp.maximum(acc, 0.0)                  # ReLU
        # LayerNorm over channels (LayerNorm(n_chans, dim=1)) in f32
        mean = jnp.mean(acc, axis=-1, keepdims=True)
        cen = acc - mean
        var = jnp.mean(cen * cen, axis=-1, keepdims=True)
        y = cen * jax.lax.rsqrt(var + EPS)
        y = y * g_ref[...] + beta_ref[...]
        # TODO(synk): torch.nn.Dropout skipped (identity at inference).
        return y * keep                              # xs * (1 - x_masks)

    h = x_ref[...]                                   # (TM, idim) f32
    for layer in range(n_layers):
        w_ref, b_ref, g_ref, beta_ref = refs[4 * layer:4 * layer + 4]
        h = conv_relu_ln_mask(h, w_ref, b_ref, g_ref, beta_ref)

    # Head: Linear(C -> 1) as a VPU multiply + lane reduce, Softplus, +1, mask.
    y = jnp.sum(h * lw_ref[...], axis=-1, keepdims=True) + lb_ref[...]
    sp = jnp.maximum(y, 0.0) + jnp.log1p(jnp.exp(-jnp.abs(y)))   # softplus
    out_ref[...] = ((sp + 1.0) * keep).astype(out_ref.dtype)


def duration_predictor(xs, x_masks, params, kernel_size=3,
                       block_items=None, target_rows=512):
    """Forward pass. xs: (B, T, idim), x_masks: (B, T) bool (True = pad)."""
    B, T, idim = xs.shape
    assert kernel_size % 2 == 1, "SAME conv assumes an odd kernel size"
    n_layers = len(params["conv"])
    n_chans = params["conv"][0][0].shape[2]
    pad = (kernel_size - 1) // 2
    assert pad <= HALO
    cmax = max(idim, n_chans)

    # Tile the flattened (B*T) row axis in units of WHOLE batch items so the
    # conv halo never crosses a tile.  target_rows is a conservative per-tile
    # budget that fits v7x's 64 MiB VMEM; raise it on v5e/v6e if desired.
    if block_items is None:
        cap = max(1, target_rows // T)
        block_items = 1
        for d in range(1, B + 1):
            if B % d == 0 and d <= cap:
                block_items = d
    assert B % block_items == 0, "block_items must divide the batch size"
    bb = block_items
    if (bb * T) % 8 != 0 and bb != B:
        bb = B          # keep sublane block dims legal (multiple of 8 or full)
    n_tiles = B // bb
    tm = bb * T

    xf = xs.reshape(B * T, idim)                              # flatten rows
    keep = (1.0 - x_masks.astype(jnp.float32)).reshape(B * T, 1)

    args = [xf, keep]
    in_specs = [pl.BlockSpec((tm, idim), lambda i: (i, 0)),
                pl.BlockSpec((tm, 1), lambda i: (i, 0))]
    for (w, b, g, beta) in params["conv"]:
        K, ci, co = w.shape
        args.extend((w.astype(jnp.bfloat16), b, g, beta))     # bf16 MXU weights
        in_specs.extend([
            pl.BlockSpec((K, ci, co), lambda i: (0, 0, 0)),
            pl.BlockSpec((1, co), lambda i: (0, 0)),
            pl.BlockSpec((1, co), lambda i: (0, 0)),
            pl.BlockSpec((1, co), lambda i: (0, 0)),
        ])
    lw_row = params["lin_w"].reshape(1, n_chans)              # (C,1) -> (1,C)
    args.extend((lw_row, params["lin_b"]))
    in_specs.extend([pl.BlockSpec((1, n_chans), lambda i: (0, 0)),
                     pl.BlockSpec((1, 1), lambda i: (0, 0))])

    kernel = functools.partial(_fused_duration_kernel, n_layers=n_layers,
                               ksize=kernel_size, seq_len=T, items=bb)
    out = pl.pallas_call(
        kernel,
        grid=(n_tiles,),
        in_specs=in_specs,
        out_specs=pl.BlockSpec((tm, 1), lambda i: (i, 0)),
        out_shape=jax.ShapeDtypeStruct((B * T, 1), xs.dtype),
        scratch_shapes=[pltpu.VMEM((tm + 2 * HALO, cmax), jnp.bfloat16)],
        compiler_params=pltpu.CompilerParams(
            dimension_semantics=("parallel",),       # shards tiles on v7x 2 TCs
            vmem_limit_bytes=64 * 1024 * 1024),
    )(*args)
    return out.reshape(B, T)


def duration_predictor_ref(xs, x_masks, params, kernel_size=3):
    """Pure-JAX f32 reference matching the PyTorch forward semantics."""
    B, T, _ = xs.shape
    pad = (kernel_size - 1) // 2
    keep3 = (1.0 - x_masks.astype(jnp.float32))[:, :, None]
    h = xs
    for (w, b, g, beta) in params["conv"]:
        hp = jnp.pad(h, ((0, 0), (pad, pad), (0, 0)))
        y = sum(jnp.einsum("btc,cd->btd", hp[:, j:j + T, :], w[j])
                for j in range(kernel_size))
        y = jax.nn.relu(y + b)
        mean = y.mean(-1, keepdims=True)
        var = ((y - mean) ** 2).mean(-1, keepdims=True)
        y = (y - mean) * jax.lax.rsqrt(var + EPS) * g + beta
        h = y * keep3
    y = jnp.einsum("btc,co->bto", h, params["lin_w"]) + params["lin_b"]
    y = jax.nn.softplus(y)[:, :, 0] + 1.0
    return y * (1.0 - x_masks.astype(jnp.float32))


def init_params(key, idim, n_layers=2, n_chans=64, kernel_size=3):
    """Deterministic synthetic parameters (module __init__ shapes).

    Conv1d weight (C_out, C_in, K) is stored as (K, C_in, C_out) so that
    conv1d(x)[t] == sum_j x_pad[t + j, :] @ W[j].
    """
    params = {"conv": []}
    for idx in range(n_layers):
        in_chans = idim if idx == 0 else n_chans
        key, kw, kb, kg, ke = jax.random.split(key, 5)
        w = 0.1 * jax.random.normal(kw, (kernel_size, in_chans, n_chans),
                                    jnp.float32)
        b = 0.1 * jax.random.normal(kb, (1, n_chans), jnp.float32)
        g = 1.0 + 0.1 * jax.random.normal(kg, (1, n_chans), jnp.float32)
        beta = 0.1 * jax.random.normal(ke, (1, n_chans), jnp.float32)
        params["conv"].append((w, b, g, beta))
    key, kw, kb = jax.random.split(key, 3)
    params["lin_w"] = 0.1 * jax.random.normal(kw, (n_chans, 1), jnp.float32)
    params["lin_b"] = 0.1 * jax.random.normal(kb, (1, 1), jnp.float32)
    return params


if __name__ == "__main__":
    B, T, idim, n_chans, n_layers, ksize = 4, 16, 32, 64, 2, 3

    key = jax.random.PRNGKey(0)
    key, kx = jax.random.split(key)
    xs = jax.random.normal(kx, (B, T, idim), jnp.float32)

    # padding mask: True where the frame is padding
    lengths = jnp.array([T, T - 3, T - 7, 5])
    x_masks = jnp.arange(T)[None, :] >= lengths[:, None]            # (B, T)

    params = init_params(key, idim, n_layers=n_layers,
                         n_chans=n_chans, kernel_size=ksize)

    # block_items=2 -> 2 batch items / tile -> grid=(2,) exercises the pipeline
    durations = duration_predictor(xs, x_masks, params, kernel_size=ksize,
                                   block_items=2)
    durations = jax.block_until_ready(durations)

    assert durations.shape == (B, T)
    assert bool(jnp.all(jnp.isfinite(durations)))
    # padded frames multiplied by exactly 0; valid frames are softplus + 1 >= 1
    assert bool(jnp.all(jnp.where(x_masks, durations == 0.0, durations >= 1.0)))

    ref = duration_predictor_ref(xs, x_masks, params, kernel_size=ksize)
    max_err = float(jnp.max(jnp.abs(durations - ref)))
    assert max_err < 0.1, f"max abs err vs f32 reference: {max_err}"

    print("KERNEL_OK")
</pallas_src>

<mosaic_0001>
module attributes {stable_mosaic.version = 11 : i64} {
  func.func @_fused_duration_kernel(%arg0: i32, %arg1: memref<32x32xf32, #tpu.memory_space<vmem>>, %arg2: memref<32x1xf32, #tpu.memory_space<vmem>>, %arg3: memref<3x32x64xbf16, #tpu.memory_space<vmem>>, %arg4: memref<1x64xf32, #tpu.memory_space<vmem>>, %arg5: memref<1x64xf32, #tpu.memory_space<vmem>>, %arg6: memref<1x64xf32, #tpu.memory_space<vmem>>, %arg7: memref<3x64x64xbf16, #tpu.memory_space<vmem>>, %arg8: memref<1x64xf32, #tpu.memory_space<vmem>>, %arg9: memref<1x64xf32, #tpu.memory_space<vmem>>, %arg10: memref<1x64xf32, #tpu.memory_space<vmem>>, %arg11: memref<1x64xf32, #tpu.memory_space<vmem>>, %arg12: memref<1x1xf32, #tpu.memory_space<vmem>>, %arg13: memref<32x1xf32, #tpu.memory_space<vmem>>, %arg14: memref<64x64xbf16, #tpu.memory_space<vmem>>) attributes {dimension_semantics = [#tpu.dimension_semantics<parallel>], iteration_bounds = array<i64: 2>, scalar_prefetch = 0 : i64, scratch_operands = 1 : i64, tpu.core_type = #tpu.core_type<tc>, window_params = [{transform_indices = @transform_0, window_bounds = array<i64: 32, 32>}, {transform_indices = @transform_1, window_bounds = array<i64: 32, 1>}, {pipeline_mode = #tpu.pipeline_mode<synchronous>, transform_indices = @transform_2, window_bounds = array<i64: 3, 32, 64>}, {pipeline_mode = #tpu.pipeline_mode<synchronous>, transform_indices = @transform_3, window_bounds = array<i64: 1, 64>}, {pipeline_mode = #tpu.pipeline_mode<synchronous>, transform_indices = @transform_4, window_bounds = array<i64: 1, 64>}, {pipeline_mode = #tpu.pipeline_mode<synchronous>, transform_indices = @transform_5, window_bounds = array<i64: 1, 64>}, {pipeline_mode = #tpu.pipeline_mode<synchronous>, transform_indices = @transform_6, window_bounds = array<i64: 3, 64, 64>}, {pipeline_mode = #tpu.pipeline_mode<synchronous>, transform_indices = @transform_7, window_bounds = array<i64: 1, 64>}, {pipeline_mode = #tpu.pipeline_mode<synchronous>, transform_indices = @transform_8, window_bounds = array<i64: 1, 64>}, {pipeline_mode = #tpu.pipeline_mode<synchronous>, transform_indices = @transform_9, window_bounds = array<i64: 1, 64>}, {pipeline_mode = #tpu.pipeline_mode<synchronous>, transform_indices = @transform_10, window_bounds = array<i64: 1, 64>}, {pipeline_mode = #tpu.pipeline_mode<synchronous>, transform_indices = @transform_11, window_bounds = array<i64: 1, 1>}, {transform_indices = @transform_12, window_bounds = array<i64: 32, 1>}]} {
    %cst = arith.constant 0.000000e+00 : bf16
    %0 = vector.broadcast %cst : bf16 to vector<16x64xbf16>
    %c0 = arith.constant 0 : index
    %c0_0 = arith.constant 0 : index
    %1 = vector.load %arg14[%c0, %c0_0] : memref<64x64xbf16, #tpu.memory_space<vmem>>, vector<16x64xbf16>
    tpu.vector_store %arg14[%c0, %c0_0], %0 {strides = array<i32>} : memref<64x64xbf16, #tpu.memory_space<vmem>>, vector<16x64xbf16>,
    %c48 = arith.constant 48 : index
    %c0_1 = arith.constant 0 : index
    %2 = vector.load %arg14[%c48, %c0_1] : memref<64x64xbf16, #tpu.memory_space<vmem>>, vector<16x64xbf16>
    tpu.vector_store %arg14[%c48, %c0_1], %0 {strides = array<i32>} : memref<64x64xbf16, #tpu.memory_space<vmem>>, vector<16x64xbf16>,
    %c0_2 = arith.constant 0 : index
    %c0_3 = arith.constant 0 : index
    %3 = vector.load %arg2[%c0_2, %c0_3] : memref<32x1xf32, #tpu.memory_space<vmem>>, vector<32x1xf32>
    %4 = tpu.iota {dimensions = array<i32: 0>} : vector<32x1xi32>
    %c16_i32 = arith.constant 16 : i32
    %c0_i32 = arith.constant 0 : i32
    %5 = arith.cmpi eq, %c16_i32, %c0_i32 : i32
    %c1_i32 = arith.constant 1 : i32
    %6 = arith.select %5, %c1_i32, %c16_i32 : i32
    %7 = vector.broadcast %6 : i32 to vector<32x1xi32>
    %8 = arith.remsi %4, %7 : vector<32x1xi32>
    %c0_i32_4 = arith.constant 0 : i32
    %9 = vector.broadcast %c0_i32_4 : i32 to vector<32x1xi32>
    %10 = arith.cmpi ne, %8, %9 : vector<32x1xi32>
    %c0_i32_5 = arith.constant 0 : i32
    %11 = vector.broadcast %c0_i32_5 : i32 to vector<32x1xi32>
    %12 = arith.cmpi slt, %8, %11 : vector<32x1xi32>
    %c0_i32_6 = arith.constant 0 : i32
    %13 = arith.cmpi slt, %6, %c0_i32_6 : i32
    %14 = vector.broadcast %13 : i1 to vector<32x1xi1>
    %15 = vector.broadcast %14 : vector<32x1xi1> to vector<32x1xi1>
    %16 = arith.xori %12, %15 : vector<32x1xi1>
    %17 = arith.andi %16, %10 : vector<32x1xi1>
    %18 = vector.broadcast %6 : i32 to vector<32x1xi32>
    %19 = arith.addi %8, %18 : vector<32x1xi32>
    %20 = arith.select %17, %19, %8 : vector<32x1xi1>, vector<32x1xi32>
    %c1_i32_7 = arith.constant 1 : i32
    %21 = vector.broadcast %c1_i32_7 : i32 to vector<32x1xi32>
    %22 = arith.cmpi sge, %20, %21 : vector<32x1xi32>
    %23 = arith.extui %22 : vector<32x1xi1> to vector<32x1xi32>
    %24 = arith.sitofp %23 : vector<32x1xi32> to vector<32x1xf32>
    %c15_i32 = arith.constant 15 : i32
    %25 = vector.broadcast %c15_i32 : i32 to vector<32x1xi32>
    %26 = arith.cmpi slt, %20, %25 : vector<32x1xi32>
    %27 = arith.extui %26 : vector<32x1xi1> to vector<32x1xi32>
    %28 = arith.sitofp %27 : vector<32x1xi32> to vector<32x1xf32>
    %c0_8 = arith.constant 0 : index
    %c0_9 = arith.constant 0 : index
    %29 = vector.load %arg1[%c0_8, %c0_9] : memref<32x32xf32, #tpu.memory_space<vmem>>, vector<32x32xf32>
    %30 = arith.truncf %29 : vector<32x32xf32> to vector<32x32xbf16>
    %c16 = arith.constant 16 : index
    %c0_10 = arith.constant 0 : index
    %31 = vector.load %arg14[%c16, %c0_10] : memref<64x64xbf16, #tpu.memory_space<vmem>>, vector<32x32xbf16>
    tpu.vector_store %arg14[%c16, %c0_10], %30 {strides = array<i32>} : memref<64x64xbf16, #tpu.memory_space<vmem>>, vector<32x32xbf16>,
    %c15 = arith.constant 15 : index
    %c0_11 = arith.constant 0 : index
    %32 = vector.load %arg14[%c15, %c0_11] : memref<64x64xbf16, #tpu.memory_space<vmem>>, vector<32x32xbf16>
    %c0_12 = arith.constant 0 : index
    %c0_13 = arith.constant 0 : index
    %c0_14 = arith.constant 0 : index
    %33 = vector.load %arg3[%c0_12, %c0_13, %c0_14] : memref<3x32x64xbf16, #tpu.memory_space<vmem>>, vector<1x32x64xbf16>
    %34 = vector.shape_cast %33 : vector<1x32x64xbf16> to vector<32x64xbf16>
    %cst_15 = arith.constant dense<0.000000e+00> : vector<32x64xf32>
    %35 = tpu.matmul %32, %34, %cst_15 {dimension_numbers = #tpu.dot_dimension_numbers<[1], [0], [0], [1], [0, 0, 1, 1], [], []>} : vector<32x32xbf16>, vector<32x64xbf16>, vector<32x64xf32> -> vector<32x64xf32>
    %36 = vector.broadcast %24 : vector<32x1xf32> to vector<32x64xf32>
    %37 = arith.mulf %35, %36 : vector<32x64xf32>
    %c16_16 = arith.constant 16 : index
    %c0_17 = arith.constant 0 : index
    %38 = vector.load %arg14[%c16_16, %c0_17] : memref<64x64xbf16, #tpu.memory_space<vmem>>, vector<32x32xbf16>
    %c1 = arith.constant 1 : index
    %c0_18 = arith.constant 0 : index
    %c0_19 = arith.constant 0 : index
    %39 = vector.load %arg3[%c1, %c0_18, %c0_19] : memref<3x32x64xbf16, #tpu.memory_space<vmem>>, vector<1x32x64xbf16>
    %40 = vector.shape_cast %39 : vector<1x32x64xbf16> to vector<32x64xbf16>
    %cst_20 = arith.constant dense<0.000000e+00> : vector<32x64xf32>
    %41 = tpu.matmul %38, %40, %cst_20 {dimension_numbers = #tpu.dot_dimension_numbers<[1], [0], [0], [1], [0, 0, 1, 1], [], []>} : vector<32x32xbf16>, vector<32x64xbf16>, vector<32x64xf32> -> vector<32x64xf32>
    %42 = arith.addf %37, %41 : vector<32x64xf32>
    %c17 = arith.constant 17 : index
    %c0_21 = arith.constant 0 : index
    %43 = vector.load %arg14[%c17, %c0_21] : memref<64x64xbf16, #tpu.memory_space<vmem>>, vector<32x32xbf16>
    %c2 = arith.constant 2 : index
    %c0_22 = arith.constant 0 : index
    %c0_23 = arith.constant 0 : index
    %44 = vector.load %arg3[%c2, %c0_22, %c0_23] : memref<3x32x64xbf16, #tpu.memory_space<vmem>>, vector<1x32x64xbf16>
    %45 = vector.shape_cast %44 : vector<1x32x64xbf16> to vector<32x64xbf16>
    %cst_24 = arith.constant dense<0.000000e+00> : vector<32x64xf32>
    %46 = tpu.matmul %43, %45, %cst_24 {dimension_numbers = #tpu.dot_dimension_numbers<[1], [0], [0], [1], [0, 0, 1, 1], [], []>} : vector<32x32xbf16>, vector<32x64xbf16>, vector<32x64xf32> -> vector<32x64xf32>
    %47 = vector.broadcast %28 : vector<32x1xf32> to vector<32x64xf32>
    %48 = arith.mulf %46, %47 : vector<32x64xf32>
    %49 = arith.addf %42, %48 : vector<32x64xf32>
    %c0_25 = arith.constant 0 : index
    %c0_26 = arith.constant 0 : index
    %50 = vector.load %arg4[%c0_25, %c0_26] : memref<1x64xf32, #tpu.memory_space<vmem>>, vector<1x64xf32>
    %51 = vector.broadcast %50 : vector<1x64xf32> to vector<32x64xf32>
    %52 = arith.addf %49, %51 : vector<32x64xf32>
    %cst_27 = arith.constant 0.000000e+00 : f32
    %53 = vector.broadcast %cst_27 : f32 to vector<32x64xf32>
    %54 = arith.maximumf %52, %53 : vector<32x64xf32>
    %cst_28 = arith.constant dense<0.000000e+00> : vector<32xf32>
    %55 = vector.multi_reduction <add>, %54, %cst_28 [1] : vector<32x64xf32> to vector<32xf32>
    %56 = vector.shape_cast %55 : vector<32xf32> to vector<32x1xf32>
    %cst_29 = arith.constant 6.400000e+01 : f32
    %57 = vector.broadcast %cst_29 : f32 to vector<32x1xf32>
    %58 = arith.divf %56, %57 : vector<32x1xf32>
    %59 = vector.broadcast %58 : vector<32x1xf32> to vector<32x64xf32>
    %60 = arith.subf %54, %59 : vector<32x64xf32>
    %61 = arith.mulf %60, %60 : vector<32x64xf32>
    %cst_30 = arith.constant dense<0.000000e+00> : vector<32xf32>
    %62 = vector.multi_reduction <add>, %61, %cst_30 [1] : vector<32x64xf32> to vector<32xf32>
    %63 = vector.shape_cast %62 : vector<32xf32> to vector<32x1xf32>
    %cst_31 = arith.constant 6.400000e+01 : f32
    %64 = vector.broadcast %cst_31 : f32 to vector<32x1xf32>
    %65 = arith.divf %63, %64 : vector<32x1xf32>
    %cst_32 = arith.constant 9.99999974E-6 : f32
    %66 = vector.broadcast %cst_32 : f32 to vector<32x1xf32>
    %67 = arith.addf %65, %66 : vector<32x1xf32>
    %68 = math.rsqrt %67 : vector<32x1xf32>
    %69 = vector.broadcast %68 : vector<32x1xf32> to vector<32x64xf32>
    %70 = arith.mulf %60, %69 : vector<32x64xf32>
    %c0_33 = arith.constant 0 : index
    %c0_34 = arith.constant 0 : index
    %71 = vector.load %arg5[%c0_33, %c0_34] : memref<1x64xf32, #tpu.memory_space<vmem>>, vector<1x64xf32>
    %72 = vector.broadcast %71 : vector<1x64xf32> to vector<32x64xf32>
    %73 = arith.mulf %70, %72 : vector<32x64xf32>
    %c0_35 = arith.constant 0 : index
    %c0_36 = arith.constant 0 : index
    %74 = vector.load %arg6[%c0_35, %c0_36] : memref<1x64xf32, #tpu.memory_space<vmem>>, vector<1x64xf32>
    %75 = vector.broadcast %74 : vector<1x64xf32> to vector<32x64xf32>
    %76 = arith.addf %73, %75 : vector<32x64xf32>
    %77 = vector.broadcast %3 : vector<32x1xf32> to vector<32x64xf32>
    %78 = arith.mulf %76, %77 : vector<32x64xf32>
    %79 = arith.truncf %78 : vector<32x64xf32> to vector<32x64xbf16>
    %c16_37 = arith.constant 16 : index
    %c0_38 = arith.constant 0 : index
    %80 = vector.load %arg14[%c16_37, %c0_38] : memref<64x64xbf16, #tpu.memory_space<vmem>>, vector<32x64xbf16>
    tpu.vector_store %arg14[%c16_37, %c0_38], %79 {strides = array<i32>} : memref<64x64xbf16, #tpu.memory_space<vmem>>, vector<32x64xbf16>,
    %c15_39 = arith.constant 15 : index
    %c0_40 = arith.constant 0 : index
    %81 = vector.load %arg14[%c15_39, %c0_40] : memref<64x64xbf16, #tpu.memory_space<vmem>>, vector<32x64xbf16>
    %c0_41 = arith.constant 0 : index
    %c0_42 = arith.constant 0 : index
    %c0_43 = arith.constant 0 : index
    %82 = vector.load %arg7[%c0_41, %c0_42, %c0_43] : memref<3x64x64xbf16, #tpu.memory_space<vmem>>, vector<1x64x64xbf16>
    %83 = vector.shape_cast %82 : vector<1x64x64xbf16> to vector<64x64xbf16>
    %cst_44 = arith.constant dense<0.000000e+00> : vector<32x64xf32>
    %84 = tpu.matmul %81, %83, %cst_44 {dimension_numbers = #tpu.dot_dimension_numbers<[1], [0], [0], [1], [0, 0, 1, 1], [], []>} : vector<32x64xbf16>, vector<64x64xbf16>, vector<32x64xf32> -> vector<32x64xf32>
    %85 = vector.broadcast %24 : vector<32x1xf32> to vector<32x64xf32>
    %86 = arith.mulf %84, %85 : vector<32x64xf32>
    %c16_45 = arith.constant 16 : index
    %c0_46 = arith.constant 0 : index
    %87 = vector.load %arg14[%c16_45, %c0_46] : memref<64x64xbf16, #tpu.memory_space<vmem>>, vector<32x64xbf16>
    %c1_47 = arith.constant 1 : index
    %c0_48 = arith.constant 0 : index
    %c0_49 = arith.constant 0 : index
    %88 = vector.load %arg7[%c1_47, %c0_48, %c0_49] : memref<3x64x64xbf16, #tpu.memory_space<vmem>>, vector<1x64x64xbf16>
    %89 = vector.shape_cast %88 : vector<1x64x64xbf16> to vector<64x64xbf16>
    %cst_50 = arith.constant dense<0.000000e+00> : vector<32x64xf32>
    %90 = tpu.matmul %87, %89, %cst_50 {dimension_numbers = #tpu.dot_dimension_numbers<[1], [0], [0], [1], [0, 0, 1, 1], [], []>} : vector<32x64xbf16>, vector<64x64xbf16>, vector<32x64xf32> -> vector<32x64xf32>
    %91 = arith.addf %86, %90 : vector<32x64xf32>
    %c17_51 = arith.constant 17 : index
    %c0_52 = arith.constant 0 : index
    %92 = vector.load %arg14[%c17_51, %c0_52] : memref<64x64xbf16, #tpu.memory_space<vmem>>, vector<32x64xbf16>
    %c2_53 = arith.constant 2 : index
    %c0_54 = arith.constant 0 : index
    %c0_55 = arith.constant 0 : index
    %93 = vector.load %arg7[%c2_53, %c0_54, %c0_55] : memref<3x64x64xbf16, #tpu.memory_space<vmem>>, vector<1x64x64xbf16>
    %94 = vector.shape_cast %93 : vector<1x64x64xbf16> to vector<64x64xbf16>
    %cst_56 = arith.constant dense<0.000000e+00> : vector<32x64xf32>
    %95 = tpu.matmul %92, %94, %cst_56 {dimension_numbers = #tpu.dot_dimension_numbers<[1], [0], [0], [1], [0, 0, 1, 1], [], []>} : vector<32x64xbf16>, vector<64x64xbf16>, vector<32x64xf32> -> vector<32x64xf32>
    %96 = vector.broadcast %28 : vector<32x1xf32> to vector<32x64xf32>
    %97 = arith.mulf %95, %96 : vector<32x64xf32>
    %98 = arith.addf %91, %97 : vector<32x64xf32>
    %c0_57 = arith.constant 0 : index
    %c0_58 = arith.constant 0 : index
    %99 = vector.load %arg8[%c0_57, %c0_58] : memref<1x64xf32, #tpu.memory_space<vmem>>, vector<1x64xf32>
    %100 = vector.broadcast %99 : vector<1x64xf32> to vector<32x64xf32>
    %101 = arith.addf %98, %100 : vector<32x64xf32>
    %cst_59 = arith.constant 0.000000e+00 : f32
    %102 = vector.broadcast %cst_59 : f32 to vector<32x64xf32>
    %103 = arith.maximumf %101, %102 : vector<32x64xf32>
    %cst_60 = arith.constant dense<0.000000e+00> : vector<32xf32>
    %104 = vector.multi_reduction <add>, %103, %cst_60 [1] : vector<32x64xf32> to vector<32xf32>
    %105 = vector.shape_cast %104 : vector<32xf32> to vector<32x1xf32>
    %cst_61 = arith.constant 6.400000e+01 : f32
    %106 = vector.broadcast %cst_61 : f32 to vector<32x1xf32>
    %107 = arith.divf %105, %106 : vector<32x1xf32>
    %108 = vector.broadcast %107 : vector<32x1xf32> to vector<32x64xf32>
    %109 = arith.subf %103, %108 : vector<32x64xf32>
    %110 = arith.mulf %109, %109 : vector<32x64xf32>
    %cst_62 = arith.constant dense<0.000000e+00> : vector<32xf32>
    %111 = vector.multi_reduction <add>, %110, %cst_62 [1] : vector<32x64xf32> to vector<32xf32>
    %112 = vector.shape_cast %111 : vector<32xf32> to vector<32x1xf32>
    %cst_63 = arith.constant 6.400000e+01 : f32
    %113 = vector.broadcast %cst_63 : f32 to vector<32x1xf32>
    %114 = arith.divf %112, %113 : vector<32x1xf32>
    %cst_64 = arith.constant 9.99999974E-6 : f32
    %115 = vector.broadcast %cst_64 : f32 to vector<32x1xf32>
    %116 = arith.addf %114, %115 : vector<32x1xf32>
    %117 = math.rsqrt %116 : vector<32x1xf32>
    %118 = vector.broadcast %117 : vector<32x1xf32> to vector<32x64xf32>
    %119 = arith.mulf %109, %118 : vector<32x64xf32>
    %c0_65 = arith.constant 0 : index
    %c0_66 = arith.constant 0 : index
    %120 = vector.load %arg9[%c0_65, %c0_66] : memref<1x64xf32, #tpu.memory_space<vmem>>, vector<1x64xf32>
    %121 = vector.broadcast %120 : vector<1x64xf32> to vector<32x64xf32>
    %122 = arith.mulf %119, %121 : vector<32x64xf32>
    %c0_67 = arith.constant 0 : index
    %c0_68 = arith.constant 0 : index
    %123 = vector.load %arg10[%c0_67, %c0_68] : memref<1x64xf32, #tpu.memory_space<vmem>>, vector<1x64xf32>
    %124 = vector.broadcast %123 : vector<1x64xf32> to vector<32x64xf32>
    %125 = arith.addf %122, %124 : vector<32x64xf32>
    %126 = vector.broadcast %3 : vector<32x1xf32> to vector<32x64xf32>
    %127 = arith.mulf %125, %126 : vector<32x64xf32>
    %c0_69 = arith.constant 0 : index
    %c0_70 = arith.constant 0 : index
    %128 = vector.load %arg11[%c0_69, %c0_70] : memref<1x64xf32, #tpu.memory_space<vmem>>, vector<1x64xf32>
    %129 = vector.broadcast %128 : vector<1x64xf32> to vector<32x64xf32>
    %130 = arith.mulf %127, %129 : vector<32x64xf32>
    %cst_71 = arith.constant dense<0.000000e+00> : vector<32xf32>
    %131 = vector.multi_reduction <add>, %130, %cst_71 [1] : vector<32x64xf32> to vector<32xf32>
    %132 = vector.shape_cast %131 : vector<32xf32> to vector<32x1xf32>
    %c0_72 = arith.constant 0 : index
    %c0_73 = arith.constant 0 : index
    %133 = vector.load %arg12[%c0_72, %c0_73] : memref<1x1xf32, #tpu.memory_space<vmem>>, vector<1x1xf32>
    %134 = vector.broadcast %133 : vector<1x1xf32> to vector<32x1xf32>
    %135 = arith.addf %132, %134 : vector<32x1xf32>
    %cst_74 = arith.constant 0.000000e+00 : f32
    %136 = vector.broadcast %cst_74 : f32 to vector<32x1xf32>
    %137 = arith.maximumf %135, %136 : vector<32x1xf32>
    %138 = math.absf %135 : vector<32x1xf32>
    %cst_75 = arith.constant 0.000000e+00 : f32
    %139 = vector.broadcast %cst_75 : f32 to vector<32x1xf32>
    %140 = arith.subf %139, %138 : vector<32x1xf32>
    %141 = math.exp %140 : vector<32x1xf32>
    %142 = math.log1p %141 : vector<32x1xf32>
    %143 = arith.addf %137, %142 : vector<32x1xf32>
    %cst_76 = arith.constant 1.000000e+00 : f32
    %144 = vector.broadcast %cst_76 : f32 to vector<32x1xf32>
    %145 = arith.addf %143, %144 : vector<32x1xf32>
    %146 = arith.mulf %145, %3 : vector<32x1xf32>
    %c0_77 = arith.constant 0 : index
    %c0_78 = arith.constant 0 : index
    %147 = vector.load %arg13[%c0_77, %c0_78] : memref<32x1xf32, #tpu.memory_space<vmem>>, vector<32x1xf32>
    tpu.vector_store %arg13[%c0_77, %c0_78], %146 {strides = array<i32>} : memref<32x1xf32, #tpu.memory_space<vmem>>, vector<32x1xf32>,
    return
  }
  func.func @transform_0(%arg0: i32) -> (i32, i32) {
    %c0_i32 = arith.constant 0 : i32
    %c0_i32_0 = arith.constant 0 : i32
    return %arg0, %c0_i32 : i32, i32
  }
  func.func @transform_1(%arg0: i32) -> (i32, i32) {
    %c0_i32 = arith.constant 0 : i32
    %c0_i32_0 = arith.constant 0 : i32
    return %arg0, %c0_i32 : i32, i32
  }
  func.func @transform_2(%arg0: i32) -> (i32, i32, i32) {
    %c0_i32 = arith.constant 0 : i32
    %c0_i32_0 = arith.constant 0 : i32
    %c0_i32_1 = arith.constant 0 : i32
    %c0_i32_2 = arith.constant 0 : i32
    return %c0_i32, %c0_i32_0, %c0_i32_1 : i32, i32, i32
  }
  func.func @transform_3(%arg0: i32) -> (i32, i32) {
    %c0_i32 = arith.constant 0 : i32
    %c0_i32_0 = arith.constant 0 : i32
    %c0_i32_1 = arith.constant 0 : i32
    return %c0_i32, %c0_i32_0 : i32, i32
  }
  func.func @transform_4(%arg0: i32) -> (i32, i32) {
    %c0_i32 = arith.constant 0 : i32
    %c0_i32_0 = arith.constant 0 : i32
    %c0_i32_1 = arith.constant 0 : i32
    return %c0_i32, %c0_i32_0 : i32, i32
  }
  func.func @transform_5(%arg0: i32) -> (i32, i32) {
    %c0_i32 = arith.constant 0 : i32
    %c0_i32_0 = arith.constant 0 : i32
    %c0_i32_1 = arith.constant 0 : i32
    return %c0_i32, %c0_i32_0 : i32, i32
  }
  func.func @transform_6(%arg0: i32) -> (i32, i32, i32) {
    %c0_i32 = arith.constant 0 : i32
    %c0_i32_0 = arith.constant 0 : i32
    %c0_i32_1 = arith.constant 0 : i32
    %c0_i32_2 = arith.constant 0 : i32
    return %c0_i32, %c0_i32_0, %c0_i32_1 : i32, i32, i32
  }
  func.func @transform_7(%arg0: i32) -> (i32, i32) {
    %c0_i32 = arith.constant 0 : i32
    %c0_i32_0 = arith.constant 0 : i32
    %c0_i32_1 = arith.constant 0 : i32
    return %c0_i32, %c0_i32_0 : i32, i32
  }
  func.func @transform_8(%arg0: i32) -> (i32, i32) {
    %c0_i32 = arith.constant 0 : i32
    %c0_i32_0 = arith.constant 0 : i32
    %c0_i32_1 = arith.constant 0 : i32
    return %c0_i32, %c0_i32_0 : i32, i32
  }
  func.func @transform_9(%arg0: i32) -> (i32, i32) {
    %c0_i32 = arith.constant 0 : i32
    %c0_i32_0 = arith.constant 0 : i32
    %c0_i32_1 = arith.constant 0 : i32
    return %c0_i32, %c0_i32_0 : i32, i32
  }
  func.func @transform_10(%arg0: i32) -> (i32, i32) {
    %c0_i32 = arith.constant 0 : i32
    %c0_i32_0 = arith.constant 0 : i32
    %c0_i32_1 = arith.constant 0 : i32
    return %c0_i32, %c0_i32_0 : i32, i32
  }
  func.func @transform_11(%arg0: i32) -> (i32, i32) {
    %c0_i32 = arith.constant 0 : i32
    %c0_i32_0 = arith.constant 0 : i32
    %c0_i32_1 = arith.constant 0 : i32
    return %c0_i32, %c0_i32_0 : i32, i32
  }
  func.func @transform_12(%arg0: i32) -> (i32, i32) {
    %c0_i32 = arith.constant 0 : i32
    %c0_i32_0 = arith.constant 0 : i32
    return %arg0, %c0_i32 : i32, i32
  }
}

</mosaic_0001>

<bundles_post_ra>
// kernel: tpu_custom_call.1
= control target key start
LH: loop header
LB: loop body
LE: loop exit
PB: predicated region body
PF: predicated region fallthrough
CT: control target
= control target key end

     0   :  { %s1833_s23 = smov 0   ;;  %s2103_s0 = inlined_call_operand.vmem [shape: f32[64,32], index: 0, kind: input, shape index: {}]   ;;  %s2104_s1 = inlined_call_operand.vmem [shape: f32[64,1], index: 1, kind: input, shape index: {}]   ;;  %s2105_s2 = inlined_call_operand.vmem [shape: bf16[3,32,64], index: 2, kind: input, shape index: {}]   ;;  %s2106_s3 = inlined_call_operand.vmem [shape: f32[1,64], index: 3, kind: input, shape index: {}]   ;;  %s2107_s4 = inlined_call_operand.vmem [shape: f32[1,64], index: 4, kind: input, shape index: {}]   ;;  %s2108_s5 = inlined_call_operand.vmem [shape: f32[1,64], index: 5, kind: input, shape index: {}]   ;;  %s2109_s6 = inlined_call_operand.vmem [shape: bf16[3,64,64], index: 6, kind: input, shape index: {}]   ;;  %s2110_s7 = inlined_call_operand.vmem [shape: f32[1,64], index: 7, kind: input, shape index: {}]   ;;  %s2111_s8 = inlined_call_operand.vmem [shape: f32[1,64], index: 8, kind: input, shape index: {}]   ;;  %s2112_s9 = inlined_call_operand.vmem [shape: f32[1,64], index: 9, kind: input, shape index: {}]   ;;  %s2113_s10 = inlined_call_operand.vmem [shape: f32[1,64], index: 10, kind: input, shape index: {}]   ;;  %s2114_s11 = inlined_call_operand.<no memory space> [shape: f32[1,1], index: 11, kind: input, shape index: {}]   ;;  %s2115_s12 = inlined_call_operand.vmem [shape: f32[64,1], index: 12, kind: output, shape index: {}]  }
   0x1   :  { %v17_v0 = vstv %s2114_s11 }
   0x2   :  { %18 = vst [vmem:[#allocation3] sm:$0x1] %v17_v0 }
   0x3 LB: > { %s1487_s24 = sadd.s32 4294967295, %s1760_s23   ;;  %p1491_p0 = scmp.ge.s32.totalorder %s1760_s23, 1  ;;  %s1760_s23 = sphi %s1833_s23, %s24_s23  }
   0x4   : > { %p376_p1 = scmp.lt.s32.totalorder %s1760_s23, 3 }
   0x6   : > { %p377_p2 = pnand %p1491_p0, %p376_p1 }
   0x7   : > { %s1492_s28 = sshll.u32 (!%p377_p2), %s1487_s24, 2 }
   0x8   : > { %380 = sbr.rel (%p377_p2) target bundleno = 1090 (0x442), region = 68  ;;  %p424_p3 = scmp.lt.s32.totalorder (!%p377_p2), %s1492_s28, 7 }
   0xd   : > { %v1629_v1 = vld [vmem:[%s2105_s2 + $0x8] sm:$0xff]  ;;  %v1631_v2 = vld [vmem:[%s2105_s2 + $0x18] sm:$0xff]  ;;  %v1628_v3 = vld [vmem:[%s2105_s2] sm:$0xff]  ;;  %vm442_vm0 = vcmask 519168   ;;  %s2117_s28 = smov (!%p424_p3, %s1492_s28), 7  ;;  %v1762_v6 = vmov 0   ;;  %v451_v58 = vlaneseq }
   0xe   : > { %1688 = vmatpush.bf16.msra.mxu2 %v1629_v1  ;;  %1690 = vmatpush.bf16.msra.mxu3 %v1631_v2  ;;  %v1630_v4 = vld [vmem:[%s2105_s2 + $0x10] sm:$0xff]  ;;  %v1635_v5 = vld [vmem:[%s2105_s2 + $0x28] sm:$0xff]  ;;  %444 = vst.msk [vmem:[#allocation2 + $0x4] sm:$0xf] %vm442_vm0, %v1762_v6  ;;  %s1857_s17 = sshll.u32 %s2117_s28, 3  ;;  %v1634_v7 = vld [vmem:[%s2105_s2 + $0x20] sm:$0xff] }
   0xf   : > { %615 = vmatpush.bf16.msra.mxu0 %v1629_v1  ;;  %663 = vmatpush.bf16.msra.mxu1 %v1631_v2  ;;  %s427_s22 = scalar_lea.vmem %s2103_s0, %s1857_s17  ;;  %445 = vst.msk [vmem:[#allocation2 + $0x18] sm:$0xf] %vm442_vm0, %v1762_v6  ;;  %vm536_vm1 = vcmask 257024   ;;  %vm602_vm2 = vcmask 261120   ;;  %vm563_vm3 = vsmask.f32 4352  ;;  %s1887_s27 = scalar_lea.vmem %s2104_s1, %s1857_s17 }
  0x10   : > { %1709 = vset.pattern.permute.xlu2 %v1762_v6  ;;  %1710 = vset.pattern.permute.xlu0 %v1762_v6  ;;  %v529_v8 = vld [vmem:[%s427_s22 + $0x8] sm:$0xff]  ;;  %v530_v9 = vld [vmem:[%s427_s22 + $0x10] sm:$0xff]  ;;  %v531_v10 = vld [vmem:[%s427_s22 + $0x18] sm:$0xff]  ;;  %vm703_vm4 = vsmask.f32 7424  ;;  %v452_v59 = vshrl.u32 %v451_v58, 7  ;;  %s2086_s14 = scalar_lea.vmem %s2115_s12, %s1857_s17 }
  0x11   : > { %1711 = vset.pattern.permute.xlu1 %v1762_v6  ;;  %v533_v11 = vpack.c.bf16 %v529_v8, %v529_v8  ;;  %v534_v12 = vpack.c.bf16 %v530_v9, %v530_v9  ;;  %v535_v13 = vpack.c.bf16 %v531_v10, %v531_v10  ;;  %v528_v14 = vld [vmem:[%s427_s22] sm:$0xff]  ;;  %v1763_v62 = vmov 0.0  }
  0x12   : > { %1689 = vmatpush.bf16.msra.mxu2 %v1628_v3  ;;  %1691 = vmatpush.bf16.msra.mxu3 %v1630_v4  ;;  %v532_v15 = vpack.c.bf16 %v528_v14, %v528_v14  ;;  %v460_v60 = vand.u32 15, %v452_v59  ;;  %v1712_v8 = vld [vmem:[%s2106_s3] ss:$0 sm:$0xff]  ;;  %vm781_vm7 = vcmask 523264  }
  0x13   : > { %616 = vmatpush.bf16.msra.mxu0 %v1628_v3  ;;  %664 = vmatpush.bf16.msra.mxu1 %v1630_v4  ;;  %538 = vst.msk [vmem:[#allocation2 + $0xc] sm:$0xf] %vm536_vm1, %v533_v11  ;;  %v453_v4 = vadd.s32 8, %v452_v59 }
  0x14   : > { %539 = vst.msk [vmem:[#allocation2 + $0x10] sm:$0xf] %vm536_vm1, %v534_v12  ;;  %vm504_vm5 = vcmp.ge.s32.totalorder %v460_v60, 1  ;;  %v1890_v12 = vld [vmem:[%s1887_s27] sm:$0xff] }
  0x15   : > { %540 = vst.msk [vmem:[#allocation2 + $0x14] sm:$0xf] %vm536_vm1, %v535_v13  ;;  %v1672_v17 = vld [vmem:[#allocation2 + $0x4] sm:$0x8]  ;;  %v1877_v63 = vsel %vm504_vm5, 1.0, %v1763_v62  ;;  %895 = vperm.xlu2 %1709, %v1890_v12  }
  0x16   : > { %748 = vmatpush.bf16.msrb.mxu2 %v1635_v5  ;;  %537 = vst.msk [vmem:[#allocation2 + $0x8] sm:$0xf] %vm536_vm1, %v532_v15  ;;  %v684_v49 = vld [vmem:[#allocation2 + $0x18] sm:$0x1]  ;;  %v454_v5 = vadd.s32 16, %v452_v59 }
  0x17   : > { %v699_v51 = vunpack.c.l.b16 %v684_v49 }
  0x18   : > { %v474_v10 = vand.u32 15, %v454_v5 }
  0x19   : > { %v702_v52 = vpack.c.b16 %v699_v51, %v699_v51 }
  0x1a   : > { %749 = vmatpush.bf16.msrb.mxu2 %v1634_v7  ;;  %v467_v7 = vand.u32 15, %v453_v4  ;;  %vm506_vm8 = vcmp.ge.s32.totalorder %v474_v10, 1  ;;  %v1933_v10 = vld [vmem:[%s1887_s27 + $0x18] sm:$0xff] }
  0x1b   : > { %v1694_v16 = vld [vmem:[#allocation2 + $0xc] sm:$0xff]   ;;  %v720_v54 = vshll.u32 %v702_v52, 16 }
  0x1c   : > { %v1667_v18 = vld [vmem:[#allocation2 + $0x10] sm:$0xff]   ;;  %v573_v20 = vshrl.u32 %v1694_v16, 16  ;;  %v576_v21 = vshll.u32 %v1694_v16, 16  ;;  %vm517_vm6 = vcmp.lt.s32.totalorder %v467_v7, 15 }
  0x1d   : > { %v1657_v19 = vunpack.c.h.b16 %v1667_v18  ;;  %1525 = vmatmul.msk.bf16.vlgmr.msra.gmra.mxu3 %vm602_vm2, %v1667_v18  ;;  %v1693_v22 = vld [vmem:[#allocation2 + $0x4] sm:$0xf0]   ;;  %v1633_v42 = vld [vmem:[#allocation2 + $0x10] sm:$0xff]  ;;  %v722_v56 = vrot.slane %v720_v54, 1 }
  0x1e   : > { %v1666_v23 = vld [vmem:[#allocation2 + $0x8] sm:$0xff]   ;;  %v1673_v24 = vor.u32 %v1693_v22, %v1672_v17  ;;  %v575_v26 = vrot.slane %v573_v20, 3  ;;  %v578_v27 = vrot.slane %v576_v21, 4  ;;  %v712_v46 = vshll.u32 %v1633_v42, 16 }
  0x1f   : > { %1524 = vmatmul.msk.bf16.vlgmr.msra.gmra.mxu1 %vm602_vm2, %v1666_v23  ;;  %v562_v25 = vpack.c.b16 %v1657_v19, %v1657_v19  ;;  %v1632_v39 = vld [vmem:[#allocation2 + $0x8] sm:$0xff]  ;;  %v716_v53 = vshrl.u32 %v1633_v42, 16  ;;  %v1893_v17 = vsel %vm517_vm6, 1.0, %v1763_v62  ;;  %v1896_v20 = vsel %vm506_vm8, 1.0, %v1763_v62 }
  0x20   : > { %v565_v28 = vshrl.u32 %v1673_v24, 16  ;;  %v568_v29 = vshll.u32 %v1673_v24, 16  ;;  %v579_v34 = vor.u32 %v578_v27, %v575_v26  ;;  %v707_v43 = vshll.u32 %v1632_v39, 16 }
  0x21   : > { %v582_v30 = vshrl.u32 %v562_v25, 16  ;;  %v585_v31 = vshll.u32 %v562_v25, 16  ;;  %v705_v44 = vshrl.u32 %v1632_v39, 16  ;;  %v714_v48 = vrot.slane %v712_v46, 1 }
  0x22   : > { %v567_v32 = vrot.slane %v565_v28, 3  ;;  %v570_v33 = vrot.slane %v568_v29, 4  ;;  %v709_v45 = vrot.slane %v707_v43, 1  ;;  %v455_v25 = vadd.s32 24, %v452_v59 }
  0x23   : > { %v584_v35 = vrot.slane %v582_v30, 3  ;;  %v587_v36 = vrot.slane %v585_v31, 4  ;;  %v718_v55 = vor.u32 %v716_v53, %v714_v48  ;;  %v1764_v46 = vmov 64.0  }
  0x24   : > { %v571_v37 = vor.u32 %v570_v33, %v567_v32  ;;  %v710_v47 = vor.u32 %v709_v45, %v705_v44  ;;  %v481_v30 = vand.u32 15, %v455_v25  ;;  %1720 = vrcp.f32 %v1764_v46 }
  0x25   : > { %v588_v38 = vor.u32 %v587_v36, %v584_v35  ;;  %v723_v57 = vsel %vm703_vm4, %v718_v55, %v722_v56 }
  0x26   : > { %v580_v40 = vsel %vm563_vm3, %v571_v37, %v579_v34  ;;  %v715_v50 = vsel %vm703_vm4, %v710_v47, %v714_v48  ;;  %vm519_vm9 = vcmp.lt.s32.totalorder %v481_v30, 15 }
  0x27   : > { %v589_v41 = vsel %vm563_vm3, %v579_v34, %v588_v38  ;;  %1510 = vmatmul.msk.bf16.vlgmr.msra.gmra.mxu0 %vm602_vm2, %v580_v40  ;;  %v1901_v37 = vsel %vm519_vm9, 1.0, %v1763_v62 }
  0x28   : > { %1511 = vmatmul.msk.bf16.vlgmr.msra.gmra.mxu2 %vm602_vm2, %v589_v41 }
  0x2a   : > { %v1721_v47 = vpop.eup %1720 }
  0x2b   : > { %v795_v48 = vmul.f32 64.0, %v1721_v47  ;;  %vm799_vm10 = vweird.f32 %v1721_v47 }
  0x2d   : > { %v796_v49 = vsub.f32 1.0, %v795_v48 }
  0x38   : > { %1546 = vmatmul.msk.bf16.vlgmr.msrb.gmra.mxu2 %vm602_vm2, %v715_v50  ;;  %v797_v50 = vmul.f32 %v1721_v47, %v796_v49  ;;  %v1638_v49 = vld [vmem:[%s2109_s6 + $0x10] sm:$0xff] }
  0x3a   : > { %v798_v51 = vadd.f32 %v1721_v47, %v797_v50 }
  0x3c   : > { %v1906_v52 = vsel %vm799_vm10, %v1721_v47, %v798_v51 }
  0x48   : > { %1547 = vmatmul.msk.bf16.gmra.mxu2 %vm602_vm2, %v723_v57 }
  0x9c   : > { %v666_v3 = vpop.f32.mrf.mxu1 }
  0xa0   : > { %v671_v26 = vpop.f32.mrf.mxu3 }
  0xa4   : > { %v618_v0 = vpop.f32.mrf.mxu0  ;;  %v668_v15 = vpop.f32.mrf.mxu1 }
  0xa5   : > { %v628_v2 = vmul.f32 %v1877_v63, %v618_v0 }
  0xa7   : > { %v676_v6 = vadd.f32 %v666_v3, %v628_v2 }
  0xa8   : > { %v673_v36 = vpop.f32.mrf.mxu3 }
  0xab   : > { %v623_v61 = vpop.f32.mrf.mxu2 }
  0xac   : > { %v620_v14 = vpop.f32.mrf.mxu0  ;;  %v630_v23 = vmul.f32 %v1896_v20, %v623_v61 }
  0xad   : > { %v677_v19 = vadd.f32 %v668_v15, %v620_v14  ;;  %v1944_v14 = vpop.permute.xlu2 %895 }
  0xae   : > { %v678_v28 = vadd.f32 %v671_v26, %v630_v23  ;;  %v1641_v23 = vld [vmem:[%s2109_s6 + $0x28] sm:$0xff] }
  0xb3   : > { %v625_v1 = vpop.f32.mrf.mxu2 }
  0xb4   : > { %v679_v40 = vadd.f32 %v673_v36, %v625_v1 }
  0xbb   : > { %v751_v9 = vpop.f32.mrf.mxu2 }
  0xbc   : > { %v765_v11 = vadd.f32 %v751_v9, %v676_v6 }
  0xbe   : > { %v773_v13 = vadd.f32 %v1712_v8, %v765_v11  ;;  %v1936_v11 = vld [vmem:[%s1887_s27 + $0x8] sm:$0xff] }
  0xc0   : > { %v777_v16 = vmax.f32 %v773_v13, 0.0  ;;  %v1941_v13 = vld [vmem:[%s1887_s27 + $0x10] sm:$0xff] }
  0xc2   : > { %v782_v18 = vsel %vm781_vm7, %v777_v16, 0.0 }
  0xc3   : > { %v753_v21 = vpop.f32.mrf.mxu2  ;;  %783 = vadd.xlane.f32.xlu0 %v782_v18  ;;  %v1643_v18 = vld [vmem:[%s2109_s6 + $0x38] sm:$0xff] }
  0xc4   : > { %v762_v22 = vmul.f32 %v1893_v17, %v753_v21  ;;  %1075 = vmatpush.bf16.msrb.mxu0 %v1643_v18  ;;  %v1642_v21 = vld [vmem:[%s2109_s6 + $0x30] sm:$0xff] }
  0xc6   : > { %v766_v24 = vadd.f32 %v762_v22, %v677_v19 }
  0xc8   : > { %v774_v27 = vadd.f32 %v1712_v8, %v766_v24  ;;  %1076 = vmatpush.bf16.msrb.mxu0 %v1642_v21 }
  0xca   : > { %v778_v29 = vmax.f32 %v774_v27, 0.0 }
  0xcb   : > { %v756_v31 = vpop.f32.mrf.mxu2 }
  0xcc   : > { %v767_v32 = vadd.f32 %v756_v31, %v678_v28  ;;  %v785_v33 = vsel %vm781_vm7, %v778_v29, 0.0  ;;  %1077 = vmatpush.bf16.msrb.mxu0 %v1641_v23 }
  0xcd   : > { %786 = vadd.xlane.f32.xlu0 %v785_v33 }
  0xce   : > { %v775_v34 = vadd.f32 %v1712_v8, %v767_v32 }
  0xd0   : > { %v779_v35 = vmax.f32 %v775_v34, 0.0 }
  0xd2   : > { %v788_v38 = vsel %vm781_vm7, %v779_v35, 0.0 }
  0xd3   : > { %789 = vadd.xlane.f32.xlu1 %v788_v38  ;;  %v758_v39 = vpop.f32.mrf.mxu2  ;;  %v1964_v38 = vld [vmem:[%s2107_s4] ss:$0 sm:$0xff] }
  0xd4   : > { %v764_v41 = vmul.f32 %v1901_v37, %v758_v39 }
  0xd6   : > { %v768_v42 = vadd.f32 %v764_v41, %v679_v40  ;;  %v1639_v41 = vld [vmem:[%s2109_s6 + $0x18] sm:$0xff] }
  0xd7   : > { %1011 = vmatpush.bf16.msrb.mxu3 %v1639_v41  ;;  %v1681_v41 = vld [vmem:[#allocation2 + $0x4] sm:$0x8] }
  0xd8   : > { %v776_v43 = vadd.f32 %v1712_v8, %v768_v42 }
  0xda   : > { %v780_v44 = vmax.f32 %v776_v43, 0.0  ;;  %v1973_v43 = vld [vmem:[%s2108_s5] ss:$0 sm:$0xff] }
  0xdb   : > { %1012 = vmatpush.bf16.msrb.mxu3 %v1638_v49 }
  0xdc   : > { %v791_v45 = vsel %vm781_vm7, %v780_v44, 0.0 }
  0xdd   : > { %792 = vadd.xlane.f32.xlu1 %v791_v45  ;;  %v1649_v45 = vld [vmem:[%s2109_s6 + $0x58] sm:$0xff] }
  0xde   : > { %1175 = vmatpush.bf16.msrb.mxu1 %v1649_v45 }
 0x136   : > { %v784_v53 = vpop.xlane.xlu0 %783 }
 0x137   : > { %v801_v54 = vmul.f32 %v1906_v52, %v784_v53 }
 0x139   : > { %v1909_v55 = vsub.f32 %v777_v16, %v801_v54  ;;  %v1648_v54 = vld [vmem:[%s2109_s6 + $0x50] sm:$0xff] }
 0x13a   : > { %1176 = vmatpush.bf16.msrb.mxu1 %v1648_v54 }
 0x13b   : > { %v809_v56 = vmul.f32 %v1909_v55, %v1909_v55 }
 0x13d   : > { %v813_v57 = vsel %vm781_vm7, %v809_v56, 0.0 }
 0x13e   : > { %814 = vadd.xlane.f32.xlu2 %v813_v57  ;;  %v1637_v57 = vld [vmem:[%s2109_s6 + $0x8] sm:$0xff] }
 0x13f   : > { %1013 = vmatpush.bf16.msrb.mxu3 %v1637_v57 }
 0x140   : > { %v787_v58 = vpop.xlane.xlu0 %786 }
 0x141   : > { %v802_v59 = vmul.f32 %v1906_v52, %v787_v58 }
 0x143   : > { %v1915_v60 = vsub.f32 %v778_v29, %v802_v59  ;;  %v1640_v29 = vld [vmem:[%s2109_s6 + $0x20] sm:$0xff] }
 0x144   : > { %1078 = vmatpush.bf16.msrb.mxu0 %v1640_v29 }
 0x145   : > { %v810_v61 = vmul.f32 %v1915_v60, %v1915_v60 }
 0x146   : > { %v790_v62 = vpop.xlane.xlu1 %789 }
 0x147   : > { %v803_v0 = vmul.f32 %v1906_v52, %v790_v62  ;;  %v816_v1 = vsel %vm781_vm7, %v810_v61, 0.0 }
 0x148   : > { %817 = vadd.xlane.f32.xlu2 %v816_v1 }
 0x149   : > { %v1921_v2 = vsub.f32 %v779_v35, %v803_v0 }
 0x14b   : > { %v811_v3 = vmul.f32 %v1921_v2, %v1921_v2 }
 0x14d   : > { %v819_v4 = vsel %vm781_vm7, %v811_v3, 0.0 }
 0x14e   : > { %820 = vadd.xlane.f32.xlu0 %v819_v4  ;;  %v1647_v4 = vld [vmem:[%s2109_s6 + $0x48] sm:$0xff] }
 0x14f   : > { %1177 = vmatpush.bf16.msrb.mxu1 %v1647_v4  ;;  %v1098_v4 = vld [vmem:[#allocation2 + $0x18] sm:$0x1] }
 0x150   : > { %v793_v5 = vpop.xlane.xlu1 %792 }
 0x151   : > { %v804_v6 = vmul.f32 %v1906_v52, %v793_v5 }
 0x153   : > { %v1927_v7 = vsub.f32 %v780_v44, %v804_v6 }
 0x155   : > { %v812_v8 = vmul.f32 %v1927_v7, %v1927_v7 }
 0x157   : > { %v822_v9 = vsel %vm781_vm7, %v812_v8, 0.0  ;;  %v1636_v8 = vld [vmem:[%s2109_s6] sm:$0xff] }
 0x158   : > { %823 = vadd.xlane.f32.xlu1 %v822_v9  ;;  %1014 = vmatpush.bf16.msrb.mxu3 %v1636_v8 }
 0x160   : > { %910 = vperm.xlu2 %1709, %v1933_v10  }
 0x162   : > { %900 = vperm.xlu0 %1710, %v1936_v11  }
 0x171   : > { %905 = vperm.xlu1 %1711, %v1941_v13  }
 0x1b1   : > { %v815_v15 = vpop.xlane.xlu2 %814 }
 0x1b2   : > { %v825_v16 = vmul.f32 %v815_v15, %v1906_v52 }
 0x1b4   : > { %v829_v19 = vadd.f32 1e-05, %v825_v16 }
 0x1b6   : > { %1722 = vrsqrt.f32 %v829_v19  ;;  %vm839_vm12 = vweird.f32 %v829_v19 }
 0x1bb   : > { %v818_v22 = vpop.xlane.xlu2 %817 }
 0x1bc   : > { %v1723_v24 = vpop.eup %1722  ;;  %v826_v25 = vmul.f32 %v818_v22, %v1906_v52 }
 0x1bd   : > { %v834_v26 = vmul.f32 %v1723_v24, %v829_v19  ;;  %vm840_vm11 = vweird.f32 %v1723_v24 }
 0x1be   : > { %v830_v27 = vadd.f32 1e-05, %v826_v25  ;;  %vm841_vm13 = vmor %vm839_vm12, %vm840_vm11 }
 0x1bf   : > { %v835_v28 = vmul.f32 %v1723_v24, %v834_v26 }
 0x1c0   : > { %1724 = vrsqrt.f32 %v830_v27  ;;  %vm849_vm15 = vweird.f32 %v830_v27 }
 0x1c1   : > { %v836_v30 = vmul.f32 0.5, %v835_v28  ;;  %v821_v31 = vpop.xlane.xlu0 %820 }
 0x1c2   : > { %v827_v32 = vmul.f32 %v821_v31, %v1906_v52 }
 0x1c3   : > { %v837_v33 = vsub.f32 1.5, %v836_v30 }
 0x1c4   : > { %v831_v34 = vadd.f32 1e-05, %v827_v32 }
 0x1c5   : > { %v838_v35 = vmul.f32 %v1723_v24, %v837_v33 }
 0x1c6   : > { %v1725_v36 = vpop.eup %1724  ;;  %1726 = vrsqrt.f32 %v831_v34  ;;  %vm859_vm5 = vweird.f32 %v831_v34 }
 0x1c7   : > { %v842_v39 = vsel %vm841_vm13, %v1723_v24, %v838_v35  ;;  %v844_v40 = vmul.f32 %v1725_v36, %v830_v27  ;;  %vm850_vm14 = vweird.f32 %v1725_v36 }
 0x1c8   : > { %v873_v42 = vmul.f32 %v842_v39, %v1909_v55  ;;  %vm851_vm1 = vmor %vm849_vm15, %vm850_vm14 }
 0x1c9   : > { %v845_v44 = vmul.f32 %v1725_v36, %v844_v40 }
 0x1ca   : > { %v881_v46 = vmul.f32 %v1964_v38, %v873_v42 }
 0x1cb   : > { %v846_v47 = vmul.f32 0.5, %v845_v44  ;;  %v824_v48 = vpop.xlane.xlu1 %823  ;;  %v2018_v44 = vpop.permute.xlu2 %910 }
 0x1cc   : > { %v1727_v50 = vpop.eup %1726  ;;  %v828_v51 = vmul.f32 %v824_v48, %v1906_v52  ;;  %v889_v53 = vadd.f32 %v1973_v43, %v881_v46 }
 0x1cd   : > { %v847_v55 = vsub.f32 1.5, %v846_v47  ;;  %v854_v56 = vmul.f32 %v1727_v50, %v831_v34  ;;  %vm860_vm2 = vweird.f32 %v1727_v50 }
 0x1ce   : > { %v832_v58 = vadd.f32 1e-05, %v828_v51  ;;  %v913_v59 = vmul.f32 %v1944_v14, %v889_v53  ;;  %vm861_vm6 = vmor %vm859_vm5, %vm860_vm2 }
 0x1cf   : > { %v848_v61 = vmul.f32 %v1725_v36, %v847_v55  ;;  %v855_v62 = vmul.f32 %v1727_v50, %v854_v56 }
 0x1d0   : > { %1728 = vrsqrt.f32 %v832_v58  ;;  %v917_v0 = vpack.c.bf16 %v913_v59, %v913_v59  ;;  %vm869_vm9 = vweird.f32 %v832_v58 }
 0x1d1   : > { %v856_v1 = vmul.f32 0.5, %v855_v62  ;;  %v852_v3 = vsel %vm851_vm1, %v1725_v36, %v848_v61 }
 0x1d2   : > { %v874_v5 = vmul.f32 %v852_v3, %v1915_v60  ;;  %921 = vst.msk [vmem:[#allocation2 + $0x8] sm:$0xf] %vm442_vm0, %v917_v0  ;;  %v1646_v60 = vld [vmem:[%s2109_s6 + $0x40] sm:$0xff] }
 0x1d3   : > { %v857_v6 = vsub.f32 1.5, %v856_v1  ;;  %1178 = vmatpush.bf16.msrb.mxu1 %v1646_v60  ;;  %v1117_v60 = vunpack.c.l.b16 %v1098_v4 }
 0x1d4   : > { %v882_v9 = vmul.f32 %v1964_v38, %v874_v5  ;;  %v2000_v16 = vpop.permute.xlu0 %900 }
 0x1d5   : > { %v858_v15 = vmul.f32 %v1727_v50, %v857_v6 }
 0x1d6   : > { %v1729_v18 = vpop.eup %1728  ;;  %v890_v19 = vadd.f32 %v1973_v43, %v882_v9 }
 0x1d7   : > { %v864_v21 = vmul.f32 %v1729_v18, %v832_v58  ;;  %v862_v22 = vsel %vm861_vm6, %v1727_v50, %v858_v15  ;;  %vm870_vm8 = vweird.f32 %v1729_v18 }
 0x1d8   : > { %v914_v23 = vmul.f32 %v2000_v16, %v890_v19  ;;  %v875_v26 = vmul.f32 %v862_v22, %v1921_v2  ;;  %vm871_vm10 = vmor %vm869_vm9, %vm870_vm8  ;;  %vm1414_vm8 = vcmask 7168  }
 0x1d9   : > { %v865_v24 = vmul.f32 %v1729_v18, %v864_v21  ;;  %v1696_v42 = vld [vmem:[#allocation2 + $0x4] sm:$0xf0]   ;;  %v1120_v21 = vpack.c.b16 %v1117_v60, %v1117_v60 }
 0x1da   : > { %v918_v25 = vpack.c.bf16 %v914_v23, %v914_v23  ;;  %v883_v29 = vmul.f32 %v1964_v38, %v875_v26  ;;  %v1682_v45 = vor.u32 %v1696_v42, %v1681_v41 }
 0x1db   : > { %v866_v27 = vmul.f32 0.5, %v865_v24  ;;  %v1137_v24 = vshll.u32 %v1120_v21, 16 }
 0x1dc   : > { %922 = vst.msk [vmem:[#allocation2 + $0xc] sm:$0xf] %vm442_vm0, %v918_v25  ;;  %v891_v33 = vadd.f32 %v1973_v43, %v883_v29  ;;  %v955_v48 = vshll.u32 %v1682_v45, 16 }
 0x1dd   : > { %v867_v28 = vsub.f32 1.5, %v866_v27 }
 0x1df   : > { %v868_v30 = vmul.f32 %v1729_v18, %v867_v28  ;;  %v1139_v28 = vrot.slane %v1137_v24, 1 }
 0x1e1   : > { %v872_v31 = vsel %vm871_vm10, %v1729_v18, %v868_v30 }
 0x1e2   : > { %v876_v32 = vmul.f32 %v872_v31, %v1927_v7 }
 0x1e3   : > { %v2012_v34 = vpop.permute.xlu1 %905  ;;  %v1668_v35 = vld [vmem:[#allocation2 + $0x8] sm:$0xff]  }
 0x1e4   : > { %v884_v2 = vmul.f32 %v1964_v38, %v876_v32  ;;  %v915_v36 = vmul.f32 %v2012_v34, %v891_v33  ;;  %1590 = vmatmul.msk.bf16.vlgmr.msrb.gmra.mxu0 %vm781_vm7, %v1668_v35  ;;  %v1644_v47 = vld [vmem:[#allocation2 + $0x8] sm:$0xff]  ;;  %v952_v38 = vshrl.u32 %v1682_v45, 16 }
 0x1e5   : > { %v1124_v50 = vshll.u32 %v1644_v47, 16  ;;  %v1122_v1 = vshrl.u32 %v1644_v47, 16 }
 0x1e6   : > { %v892_v39 = vadd.f32 %v1973_v43, %v884_v2  ;;  %v919_v40 = vpack.c.bf16 %v915_v36, %v915_v36  ;;  %v954_v51 = vrot.slane %v952_v38, 3  ;;  %v957_v43 = vrot.slane %v955_v48, 4  ;;  %v1715_v36 = vld [vmem:[%s2110_s7] ss:$0 sm:$0xff] }
 0x1e7   : > { %v1126_v59 = vrot.slane %v1124_v50, 1 }
 0x1e8   : > { %v916_v7 = vmul.f32 %v2018_v44, %v892_v39  ;;  %923 = vst.msk [vmem:[#allocation2 + $0x10] sm:$0xf] %vm442_vm0, %v919_v40  ;;  %v958_v62 = vor.u32 %v957_v43, %v954_v51 }
 0x1e9   : > { %v1127_v8 = vor.u32 %v1126_v59, %v1122_v1 }
 0x1ea   : > { %v920_v46 = vpack.c.bf16 %v916_v7, %v916_v7 }
 0x1ec   : > { %924 = vst.msk [vmem:[#allocation2 + $0x14] sm:$0xf] %vm442_vm0, %v920_v46 }
 0x1ef   : > { %v1697_v49 = vld [vmem:[#allocation2 + $0xc] sm:$0xff]  }
 0x1f0   : > { %v960_v53 = vshrl.u32 %v1697_v49, 16  ;;  %v963_v54 = vshll.u32 %v1697_v49, 16 }
 0x1f2   : > { %v962_v56 = vrot.slane %v960_v53, 3  ;;  %v965_v57 = vrot.slane %v963_v54, 4 }
 0x1f3   : > { %v1669_v55 = vld [vmem:[#allocation2 + $0x10] sm:$0xff]  }
 0x1f4   : > { %v1645_v58 = vld [vmem:[#allocation2 + $0x10] sm:$0xff]  ;;  %v1665_v61 = vunpack.c.h.b16 %v1669_v55  ;;  %1591 = vmatmul.msk.bf16.gmra.mxu0 %vm781_vm7, %v1669_v55  ;;  %v966_v0 = vor.u32 %v965_v57, %v962_v56 }
 0x1f5   : > { %v1129_v3 = vshll.u32 %v1645_v58, 16  ;;  %v1133_v26 = vshrl.u32 %v1645_v58, 16 }
 0x1f6   : > { %v950_v5 = vpack.c.b16 %v1665_v61, %v1665_v61  ;;  %v967_v6 = vsel %vm563_vm3, %v958_v62, %v966_v0 }
 0x1f7   : > { %v1131_v9 = vrot.slane %v1129_v3, 1  ;;  %1564 = vmatmul.msk.bf16.vlgmr.msrb.gmra.mxu3 %vm781_vm7, %v967_v6 }
 0x1f8   : > { %v969_v18 = vshrl.u32 %v950_v5, 16  ;;  %v972_v19 = vshll.u32 %v950_v5, 16 }
 0x1f9   : > { %v1132_v15 = vsel %vm703_vm4, %v1127_v8, %v1131_v9  ;;  %v1135_v27 = vor.u32 %v1133_v26, %v1131_v9 }
 0x1fa   : > { %1624 = vmatmul.msk.bf16.vlgmr.msrb.gmra.mxu1 %vm781_vm7, %v1132_v15  ;;  %v971_v22 = vrot.slane %v969_v18, 3  ;;  %v974_v23 = vrot.slane %v972_v19, 4 }
 0x1fb   : > { %v1140_v30 = vsel %vm703_vm4, %v1135_v27, %v1139_v28 }
 0x1fc   : > { %v975_v25 = vor.u32 %v974_v23, %v971_v22 }
 0x1fe   : > { %v976_v29 = vsel %vm563_vm3, %v966_v0, %v975_v25 }
 0x207   : > { %1565 = vmatmul.msk.bf16.gmra.mxu3 %vm781_vm7, %v976_v29 }
 0x20a   : > { %1625 = vmatmul.msk.bf16.gmra.mxu1 %vm781_vm7, %v1140_v30 }
 0x261   : > { %v1080_v31 = vpop.f32.mrf.mxu0 }
 0x269   : > { %v1082_v39 = vpop.f32.mrf.mxu0 }
 0x271   : > { %v1085_v50 = vpop.f32.mrf.mxu0 }
 0x277   : > { %v1180_v32 = vpop.f32.mrf.mxu1 }
 0x279   : > { %v1087_v58 = vpop.f32.mrf.mxu0 }
 0x27a   : > { %v1016_v33 = vpop.f32.mrf.mxu3 }
 0x27b   : > { %v1026_v35 = vmul.f32 %v1877_v63, %v1016_v33 }
 0x27d   : > { %v1090_v2 = vadd.f32 %v1080_v31, %v1026_v35 }
 0x27f   : > { %v1182_v40 = vpop.f32.mrf.mxu1  ;;  %v1194_v41 = vadd.f32 %v1180_v32, %v1090_v2 }
 0x280   : > { %v1191_v45 = vmul.f32 %v1893_v17, %v1182_v40 }
 0x281   : > { %v1202_v42 = vadd.f32 %v1715_v36, %v1194_v41 }
 0x282   : > { %v1018_v7 = vpop.f32.mrf.mxu3 }
 0x283   : > { %v1091_v46 = vadd.f32 %v1082_v39, %v1018_v7  ;;  %v1206_v47 = vmax.f32 %v1202_v42, 0.0 }
 0x285   : > { %v1195_v38 = vadd.f32 %v1191_v45, %v1091_v46  ;;  %v1210_v48 = vsel %vm781_vm7, %v1206_v47, 0.0 }
 0x286   : > { %1211 = vadd.xlane.f32.xlu2 %v1210_v48 }
 0x287   : > { %v1185_v49 = vpop.f32.mrf.mxu1  ;;  %v1203_v63 = vadd.f32 %v1715_v36, %v1195_v38 }
 0x289   : > { %v1207_v51 = vmax.f32 %v1203_v63, 0.0 }
 0x28a   : > { %v1021_v43 = vpop.f32.mrf.mxu3 }
 0x28b   : > { %v1028_v53 = vmul.f32 %v1896_v20, %v1021_v43  ;;  %v1213_v54 = vsel %vm781_vm7, %v1207_v51, 0.0  ;;  %v1716_v43 = vld [vmem:[%s2111_s8] ss:$0 sm:$0xff] }
 0x28c   : > { %1214 = vadd.xlane.f32.xlu1 %v1213_v54 }
 0x28d   : > { %v1092_v55 = vadd.f32 %v1085_v50, %v1028_v53 }
 0x28f   : > { %v1196_v56 = vadd.f32 %v1185_v49, %v1092_v55  ;;  %v1187_v57 = vpop.f32.mrf.mxu1 }
 0x290   : > { %v1193_v61 = vmul.f32 %v1901_v37, %v1187_v57 }
 0x291   : > { %v1204_v17 = vadd.f32 %v1715_v36, %v1196_v56 }
 0x292   : > { %v1023_v59 = vpop.f32.mrf.mxu3 }
 0x293   : > { %v1093_v62 = vadd.f32 %v1087_v58, %v1023_v59  ;;  %v1208_v0 = vmax.f32 %v1204_v17, 0.0  ;;  %v1717_v17 = vld [vmem:[%s2112_s9] ss:$0 sm:$0xff] }
 0x295   : > { %v1197_v1 = vadd.f32 %v1193_v61, %v1093_v62  ;;  %v1216_v3 = vsel %vm781_vm7, %v1208_v0, 0.0 }
 0x296   : > { %1217 = vadd.xlane.f32.xlu0 %v1216_v3  ;;  %v1718_v3 = vld [vmem:[%s2113_s10] ss:$0 sm:$0xff] }
 0x297   : > { %v1205_v4 = vadd.f32 %v1715_v36, %v1197_v1 }
 0x299   : > { %v1209_v5 = vmax.f32 %v1205_v4, 0.0 }
 0x29b   : > { %v1219_v20 = vsel %vm781_vm7, %v1209_v5, 0.0 }
 0x29c   : > { %1220 = vadd.xlane.f32.xlu2 %v1219_v20 }
 0x2f9   : > { %v1212_v6 = vpop.xlane.xlu2 %1211 }
 0x2fa   : > { %v1222_v8 = vmul.f32 %v1212_v6, %v1906_v52 }
 0x2fc   : > { %v1226_v9 = vsub.f32 %v1206_v47, %v1222_v8 }
 0x2fe   : > { %v1230_v15 = vmul.f32 %v1226_v9, %v1226_v9 }
 0x2ff   : > { %v1215_v60 = vpop.xlane.xlu1 %1214 }
 0x300   : > { %v1223_v18 = vmul.f32 %v1215_v60, %v1906_v52  ;;  %v1234_v37 = vsel %vm781_vm7, %v1230_v15, 0.0 }
 0x301   : > { %1235 = vadd.xlane.f32.xlu1 %v1234_v37 }
 0x302   : > { %v1227_v19 = vsub.f32 %v1207_v51, %v1223_v18 }
 0x304   : > { %v1231_v21 = vmul.f32 %v1227_v19, %v1227_v19 }
 0x306   : > { %v1237_v22 = vsel %vm781_vm7, %v1231_v21, 0.0 }
 0x307   : > { %1238 = vadd.xlane.f32.xlu2 %v1237_v22 }
 0x309   : > { %v1218_v23 = vpop.xlane.xlu0 %1217 }
 0x30a   : > { %v1224_v24 = vmul.f32 %v1218_v23, %v1906_v52 }
 0x30c   : > { %v2048_v25 = vsub.f32 %v1208_v0, %v1224_v24 }
 0x30e   : > { %v1232_v26 = vmul.f32 %v2048_v25, %v2048_v25 }
 0x30f   : > { %v1221_v27 = vpop.xlane.xlu2 %1220 }
 0x310   : > { %v1225_v28 = vmul.f32 %v1221_v27, %v1906_v52  ;;  %v1240_v29 = vsel %vm781_vm7, %v1232_v26, 0.0 }
 0x311   : > { %1241 = vadd.xlane.f32.xlu1 %v1240_v29 }
 0x312   : > { %v2054_v30 = vsub.f32 %v1209_v5, %v1225_v28 }
 0x314   : > { %v1233_v31 = vmul.f32 %v2054_v30, %v2054_v30 }
 0x316   : > { %v1243_v32 = vsel %vm781_vm7, %v1233_v31, 0.0 }
 0x317   : > { %1244 = vadd.xlane.f32.xlu2 %v1243_v32 }
 0x374   : > { %v1236_v33 = vpop.xlane.xlu1 %1235 }
 0x375   : > { %v1246_v35 = vmul.f32 %v1236_v33, %v1906_v52 }
 0x377   : > { %v1250_v2 = vadd.f32 1e-05, %v1246_v35 }
 0x379   : > { %1730 = vrsqrt.f32 %v1250_v2  ;;  %vm1260_vm3 = vweird.f32 %v1250_v2 }
 0x37a   : > { %v1239_v36 = vpop.xlane.xlu2 %1238 }
 0x37b   : > { %v1247_v39 = vmul.f32 %v1239_v36, %v1906_v52 }
 0x37d   : > { %v1251_v40 = vadd.f32 1e-05, %v1247_v39 }
 0x37f   : > { %v1731_v41 = vpop.eup %1730  ;;  %1732 = vrsqrt.f32 %v1251_v40  ;;  %vm1270_vm12 = vweird.f32 %v1251_v40 }
 0x380   : > { %v1255_v42 = vmul.f32 %v1731_v41, %v1250_v2  ;;  %vm1261_vm0 = vweird.f32 %v1731_v41 }
 0x381   : > { %vm1262_vm4 = vmor %vm1260_vm3, %vm1261_vm0 }
 0x382   : > { %v1256_v7 = vmul.f32 %v1731_v41, %v1255_v42 }
 0x384   : > { %v1257_v45 = vmul.f32 0.5, %v1256_v7  ;;  %v1242_v46 = vpop.xlane.xlu1 %1241 }
 0x385   : > { %v1733_v47 = vpop.eup %1732  ;;  %v1248_v38 = vmul.f32 %v1242_v46, %v1906_v52  ;;  %v1719_v46 = vld [vmem:[#allocation3] ss:$0 sm:$0xff] }
 0x386   : > { %v1258_v48 = vsub.f32 1.5, %v1257_v45  ;;  %v1265_v49 = vmul.f32 %v1733_v47, %v1251_v40  ;;  %vm1271_vm11 = vweird.f32 %v1733_v47 }
 0x387   : > { %v1252_v63 = vadd.f32 1e-05, %v1248_v38  ;;  %vm1272_vm13 = vmor %vm1270_vm12, %vm1271_vm11 }
 0x388   : > { %v1259_v50 = vmul.f32 %v1731_v41, %v1258_v48  ;;  %v1266_v51 = vmul.f32 %v1733_v47, %v1265_v49 }
 0x389   : > { %1734 = vrsqrt.f32 %v1252_v63  ;;  %vm1280_vm15 = vweird.f32 %v1252_v63 }
 0x38a   : > { %v1263_v53 = vsel %vm1262_vm4, %v1731_v41, %v1259_v50  ;;  %v1267_v54 = vmul.f32 0.5, %v1266_v51  ;;  %v1245_v55 = vpop.xlane.xlu2 %1244 }
 0x38b   : > { %v1294_v56 = vmul.f32 %v1263_v53, %v1226_v9  ;;  %v1249_v57 = vmul.f32 %v1245_v55, %v1906_v52 }
 0x38c   : > { %v1268_v58 = vsub.f32 1.5, %v1267_v54 }
 0x38d   : > { %v1253_v59 = vadd.f32 1e-05, %v1249_v57  ;;  %v1302_v61 = vmul.f32 %v1716_v43, %v1294_v56 }
 0x38e   : > { %v1269_v62 = vmul.f32 %v1733_v47, %v1268_v58 }
 0x38f   : > { %v1735_v0 = vpop.eup %1734  ;;  %1736 = vrsqrt.f32 %v1253_v59  ;;  %v1310_v1 = vadd.f32 %v1717_v17, %v1302_v61  ;;  %vm1290_vm5 = vweird.f32 %v1253_v59 }
 0x390   : > { %v1273_v4 = vsel %vm1272_vm13, %v1733_v47, %v1269_v62  ;;  %v1275_v52 = vmul.f32 %v1735_v0, %v1252_v63  ;;  %vm1281_vm14 = vweird.f32 %v1735_v0 }
 0x391   : > { %v1295_v5 = vmul.f32 %v1273_v4, %v1227_v19  ;;  %v1314_v20 = vmul.f32 %v1310_v1, %v1944_v14  ;;  %vm1282_vm1 = vmor %vm1280_vm15, %vm1281_vm14 }
 0x392   : > { %v1276_v6 = vmul.f32 %v1735_v0, %v1275_v52 }
 0x393   : > { %v1322_v8 = vmul.f32 %v1718_v3, %v1314_v20  ;;  %v1303_v9 = vmul.f32 %v1716_v43, %v1295_v5 }
 0x394   : > { %v1277_v15 = vmul.f32 0.5, %v1276_v6 }
 0x395   : > { %v1737_v60 = vpop.eup %1736  ;;  %v1326_v18 = vsel %vm781_vm7, %v1322_v8, 0.0  ;;  %v1311_v37 = vadd.f32 %v1717_v17, %v1303_v9 }
 0x396   : > { %v1278_v21 = vsub.f32 1.5, %v1277_v15  ;;  %v1285_v22 = vmul.f32 %v1737_v60, %v1253_v59  ;;  %1327 = vadd.xlane.f32.xlu0 %v1326_v18  ;;  %vm1291_vm2 = vweird.f32 %v1737_v60 }
 0x397   : > { %v1315_v23 = vmul.f32 %v1311_v37, %v2000_v16  ;;  %vm1292_vm6 = vmor %vm1290_vm5, %vm1291_vm2 }
 0x398   : > { %v1279_v24 = vmul.f32 %v1735_v0, %v1278_v21  ;;  %v1286_v26 = vmul.f32 %v1737_v60, %v1285_v22 }
 0x399   : > { %v1323_v19 = vmul.f32 %v1718_v3, %v1315_v23 }
 0x39a   : > { %v1283_v14 = vsel %vm1282_vm1, %v1735_v0, %v1279_v24  ;;  %v1287_v27 = vmul.f32 0.5, %v1286_v26 }
 0x39b   : > { %v1296_v28 = vmul.f32 %v1283_v14, %v2048_v25  ;;  %v1329_v29 = vsel %vm781_vm7, %v1323_v19, 0.0 }
 0x39c   : > { %v1288_v31 = vsub.f32 1.5, %v1287_v27  ;;  %1330 = vadd.xlane.f32.xlu1 %v1329_v29 }
 0x39d   : > { %v1304_v32 = vmul.f32 %v1716_v43, %v1296_v28 }
 0x39e   : > { %v1289_v33 = vmul.f32 %v1737_v60, %v1288_v31 }
 0x39f   : > { %v1312_v35 = vadd.f32 %v1717_v17, %v1304_v32 }
 0x3a0   : > { %v1293_v16 = vsel %vm1292_vm6, %v1737_v60, %v1289_v33 }
 0x3a1   : > { %v1297_v2 = vmul.f32 %v1293_v16, %v2054_v30  ;;  %v1316_v36 = vmul.f32 %v1312_v35, %v2012_v34 }
 0x3a3   : > { %v1324_v39 = vmul.f32 %v1718_v3, %v1316_v36  ;;  %v1305_v40 = vmul.f32 %v1716_v43, %v1297_v2 }
 0x3a5   : > { %v1332_v41 = vsel %vm781_vm7, %v1324_v39, 0.0  ;;  %v1313_v25 = vadd.f32 %v1717_v17, %v1305_v40 }
 0x3a6   : > { %1333 = vadd.xlane.f32.xlu2 %v1332_v41 }
 0x3a7   : > { %v1317_v42 = vmul.f32 %v1313_v25, %v2018_v44 }
 0x3a9   : > { %v1325_v7 = vmul.f32 %v1718_v3, %v1317_v42 }
 0x3ab   : > { %v1335_v45 = vsel %vm781_vm7, %v1325_v7, 0.0 }
 0x3ac   : > { %1336 = vadd.xlane.f32.xlu0 %v1335_v45 }
 0x409   : > { %v1328_v47 = vpop.xlane.xlu0 %1327 }
 0x40a   : > { %v1342_v38 = vadd.f32 %v1719_v46, %v1328_v47 }
 0x40c   : > { %v1350_v48 = vand.u32 2147483647, %v1342_v38  ;;  %v1346_v8 = vmax.f32 %v1342_v38, 0.0 }
 0x40e   : > { %v1354_v49 = vsub.f32 0.0, %v1350_v48 }
 0x40f   : > { %v1331_v30 = vpop.xlane.xlu1 %1330 }
 0x410   : > { %v1358_v63 = vmul.f32 1.442695, %v1354_v49  ;;  %v1343_v34 = vadd.f32 %v1719_v46, %v1331_v30 }
 0x412   : > { %1738 = vpow2.f32 %v1358_v63  ;;  %v1351_v50 = vand.u32 2147483647, %v1343_v34  ;;  %v1347_v27 = vmax.f32 %v1343_v34, 0.0 }
 0x414   : > { %v1355_v51 = vsub.f32 0.0, %v1351_v50 }
 0x416   : > { %v1360_v43 = vmul.f32 1.442695, %v1355_v51 }
 0x418   : > { %v1739_v53 = vpop.eup %1738  ;;  %1740 = vpow2.f32 %v1360_v43 }
 0x419   : > { %v1366_v54 = vadd.f32 1.0, %v1739_v53  ;;  %v1334_v44 = vpop.xlane.xlu2 %1333  ;;  %v1369_v55 = vmul.f32 -0.5, %v1739_v53  ;;  %v1372_v61 = vand.u32 2147483647, %v1739_v53 }
 0x41a   : > { %v1344_v56 = vadd.f32 %v1719_v46, %v1334_v44 }
 0x41b   : > { %1742 = vlog2.f32 %v1366_v54  ;;  %v1370_v58 = vadd.f32 1.0, %v1369_v55  ;;  %vm1373_vm7 = vcmp.lt.f32.partialorder %v1372_v61, 0.0004427343 }
 0x41c   : > { %v1352_v57 = vand.u32 2147483647, %v1344_v56  ;;  %v1348_v42 = vmax.f32 %v1344_v56, 0.0 }
 0x41d   : > { %v1371_v20 = vmul.f32 %v1739_v53, %v1370_v58 }
 0x41e   : > { %v1741_v17 = vpop.eup %1740  ;;  %v1356_v59 = vsub.f32 0.0, %v1352_v57 }
 0x41f   : > { %v1375_v62 = vadd.f32 1.0, %v1741_v17  ;;  %v1337_v0 = vpop.xlane.xlu0 %1336  ;;  %v1378_v1 = vmul.f32 -0.5, %v1741_v17  ;;  %v1381_v37 = vand.u32 2147483647, %v1741_v17 }
 0x420   : > { %v1362_v3 = vmul.f32 1.442695, %v1356_v59  ;;  %v1345_v4 = vadd.f32 %v1719_v46, %v1337_v0 }
 0x421   : > { %v1743_v52 = vpop.eup %1742  ;;  %1744 = vlog2.f32 %v1375_v62  ;;  %v1379_v15 = vadd.f32 1.0, %v1378_v1  ;;  %vm1382_vm9 = vcmp.lt.f32.partialorder %v1381_v37, 0.0004427343 }
 0x422   : > { %v1368_v5 = vmul.f32 0.6931472, %v1743_v52  ;;  %1746 = vpow2.f32 %v1362_v3  ;;  %v1353_v6 = vand.u32 2147483647, %v1345_v4  ;;  %v1349_v63 = vmax.f32 %v1345_v4, 0.0 }
 0x423   : > { %v1380_v19 = vmul.f32 %v1741_v17, %v1379_v15 }
 0x424   : > { %v1374_v9 = vsel %vm1373_vm7, %v1371_v20, %v1368_v5  ;;  %v1357_v60 = vsub.f32 0.0, %v1353_v6 }
 0x425   : > { %v1402_v18 = vadd.f32 %v1374_v9, %v1346_v8 }
 0x426   : > { %v1364_v21 = vmul.f32 1.442695, %v1357_v60 }
 0x427   : > { %v1745_v22 = vpop.eup %1744  ;;  %v1406_v23 = vadd.f32 1.0, %v1402_v18 }
 0x428   : > { %v1747_v24 = vpop.eup %1746  ;;  %v1377_v26 = vmul.f32 0.6931472, %v1745_v22  ;;  %1748 = vpow2.f32 %v1364_v21 }
 0x429   : > { %v1410_v14 = vmul.f32 %v1406_v23, %v1890_v12  ;;  %v1384_v28 = vadd.f32 1.0, %v1747_v24  ;;  %v1387_v31 = vmul.f32 -0.5, %v1747_v24  ;;  %v1390_v36 = vand.u32 2147483647, %v1747_v24 }
 0x42a   : > { %v1383_v29 = vsel %vm1382_vm9, %v1380_v19, %v1377_v26 }
 0x42b   : > { %1415 = vst.msk [vmem:[%s2086_s14] sm:$0xff] %vm1414_vm8, %v1410_v14  ;;  %v1403_v32 = vadd.f32 %v1383_v29, %v1347_v27  ;;  %1750 = vlog2.f32 %v1384_v28  ;;  %v1388_v16 = vadd.f32 1.0, %v1387_v31  ;;  %vm1391_vm10 = vcmp.lt.f32.partialorder %v1390_v36, 0.0004427343 }
 0x42d   : > { %v1407_v33 = vadd.f32 1.0, %v1403_v32  ;;  %v1389_v25 = vmul.f32 %v1747_v24, %v1388_v16 }
 0x42e   : > { %v1749_v35 = vpop.eup %1748 }
 0x42f   : > { %v1411_v2 = vmul.f32 %v1407_v33, %v1936_v11  ;;  %v1393_v39 = vadd.f32 1.0, %v1749_v35  ;;  %v1396_v40 = vmul.f32 -0.5, %v1749_v35  ;;  %v1399_v47 = vand.u32 2147483647, %v1749_v35 }
 0x431   : > { %v1751_v41 = vpop.eup %1750  ;;  %1416 = vst.msk [vmem:[%s2086_s14 + $0x8] sm:$0xff] %vm1414_vm8, %v1411_v2  ;;  %1752 = vlog2.f32 %v1393_v39  ;;  %v1397_v45 = vadd.f32 1.0, %v1396_v40  ;;  %vm1400_vm0 = vcmp.lt.f32.partialorder %v1399_v47, 0.0004427343 }
 0x432   : > { %v1386_v12 = vmul.f32 0.6931472, %v1751_v41 }
 0x433   : > { %v1398_v49 = vmul.f32 %v1749_v35, %v1397_v45 }
 0x434   : > { %v1392_v7 = vsel %vm1391_vm10, %v1389_v25, %v1386_v12 }
 0x435   : > { %v1404_v46 = vadd.f32 %v1392_v7, %v1348_v42 }
 0x437   : > { %v1753_v38 = vpop.eup %1752  ;;  %v1408_v48 = vadd.f32 1.0, %v1404_v46 }
 0x438   : > { %v1395_v11 = vmul.f32 0.6931472, %v1753_v38 }
 0x439   : > { %v1412_v30 = vmul.f32 %v1408_v48, %v1941_v13 }
 0x43a   : > { %v1401_v34 = vsel %vm1400_vm0, %v1398_v49, %v1395_v11 }
 0x43b   : > { %1417 = vst.msk [vmem:[%s2086_s14 + $0x10] sm:$0xff] %vm1414_vm8, %v1412_v30  ;;  %v1405_v50 = vadd.f32 %v1401_v34, %v1349_v63 }
 0x43d   : > { %v1409_v51 = vadd.f32 1.0, %v1405_v50 }
 0x43f   : > { %v1413_v43 = vmul.f32 %v1409_v51, %v1933_v10 }
 0x441   : > { %1418 = vst.msk [vmem:[%s2086_s14 + $0x18] sm:$0xff] %vm1414_vm8, %v1413_v43 }
 0x442 PF: > { %s24_s23 = sadd.s32 1, %s1760_s23  }
 0x443   : > { %p21_p4 = scmp.ge.s32.totalorder %s24_s23, 4  }
 0x445   :  { %23 = sbr.rel (!%p21_p4) target bundleno = 3 (0x3), region = 105 }

</bundles_post_ra>
